<compile_context>
chip_gen: v5e
topology: v5e:2x2
jax: 0.10.0
libtpu: 0.0.40
codegen_flags: <defaults>
</compile_context>

<pallas_src>
import jax
import jax.numpy as jnp
from jax.experimental import pallas as pl
from jax.experimental.pallas import tpu as pltpu


def _mlp_kernel(x_ref, w1_ref, b1_ref, w2_ref, b2_ref, w3_ref, b3_ref, o_ref):
    """Fused 3-layer MLP: relu(relu(x W1 + b1) W2 + b2) W3 + b3 (weights pre-transposed)."""
    x = x_ref[...]

    # Layer 0: inputSize -> internalSize, ReLU (dropout p=0 == identity)
    h = jnp.dot(x, w1_ref[...], preferred_element_type=jnp.float32) + b1_ref[...]
    h = jnp.maximum(h, 0.0)

    # Layer 1: internalSize -> internalSize, ReLU
    h = jnp.dot(h, w2_ref[...], preferred_element_type=jnp.float32) + b2_ref[...]
    h = jnp.maximum(h, 0.0)

    # Layer 2 (final): inputSize(==internalSize) -> outputSize (lane-padded), no activation
    o = jnp.dot(h, w3_ref[...], preferred_element_type=jnp.float32) + b3_ref[...]
    o_ref[...] = o.astype(o_ref.dtype)


def linear_model_forward(x, params, *, tile_b=None):
    """x: (B, inputSize).  params: list of (W, b) per layer (3 layers, PyTorch layout)."""
    (w1, b1), (w2, b2), (w3, b3) = params
    B, d_in = x.shape
    internal = w1.shape[0]
    out_sz = w3.shape[0]

    # Module quirk: last layer has in_features == inputSize -> requires internal == d_in.
    assert w3.shape[1] == d_in, "last layer expects in_features == inputSize (module quirk)"
    assert internal == d_in, "forward is only shape-valid when inputSize == internalSize"

    LANE = 128
    out_pad = ((out_sz + LANE - 1) // LANE) * LANE

    # Pre-transpose weights once in the wrapper (hoists the transpose out of the kernel)
    # and zero-pad the final layer to a lane-dense (multiple-of-128) output width.
    w1t = w1.T                                                         # (d_in, internal)
    w2t = w2.T                                                         # (internal, internal)
    w3t = jnp.zeros((d_in, out_pad), w3.dtype).at[:, :out_sz].set(w3.T)
    b1r = b1.reshape(1, -1)
    b2r = b2.reshape(1, -1)
    b3r = jnp.zeros((1, out_pad), b3.dtype).at[:, :out_sz].set(b3.reshape(1, -1))

    # Pick a large batch tile (amortize per-grid-step overhead), but aim for a grid of
    # >= 2 parallel steps so v7x megacore can shard it.  Keep tile_b a multiple of 8
    # (sublane constraint).  VMEM footprint per tile is tiny (< 1 MiB even at 1024 rows).
    if tile_b is None:
        half = max(pl.cdiv(B, 2), 8)
        tile_b = min(1024, ((half + 7) // 8) * 8)

    # Pad batch to a tile multiple (padded rows compute harmless zeros, sliced off below).
    Bp = pl.cdiv(B, tile_b) * tile_b
    xp = x if Bp == B else jnp.zeros((Bp, d_in), x.dtype).at[:B, :].set(x)

    grid = (Bp // tile_b,)
    const = lambda shape: pl.BlockSpec(shape, lambda i: (0, 0))  # loop-invariant params

    out_full = pl.pallas_call(
        _mlp_kernel,
        out_shape=jax.ShapeDtypeStruct((Bp, out_pad), x.dtype),
        grid_spec=pltpu.PrefetchScalarGridSpec(
            num_scalar_prefetch=0,
            grid=grid,
            in_specs=[
                pl.BlockSpec((tile_b, d_in), lambda i: (i, 0)),   # x tile
                const(w1t.shape), const(b1r.shape),               # layer 0 params
                const(w2t.shape), const(b2r.shape),               # layer 1 params
                const(w3t.shape), const(b3r.shape),               # layer 2 params
            ],
            out_specs=pl.BlockSpec((tile_b, out_pad), lambda i: (i, 0)),
        ),
        compiler_params=pltpu.CompilerParams(
            dimension_semantics=("parallel",),
        ),
    )(xp, w1t, b1r, w2t, b2r, w3t, b3r)

    return out_full[:B, :out_sz]


def init_params(key, num_layers, input_size, internal_size, output_size):
    """Deterministic parameter init mirroring the module's layer shapes."""
    params = []
    for i in range(num_layers):
        if i == 0:
            fan_in, fan_out = input_size, internal_size
        elif i == num_layers - 1:
            fan_in, fan_out = input_size, output_size   # quirk preserved from __init__
        else:
            fan_in, fan_out = internal_size, internal_size
        key, kw, kb = jax.random.split(key, 3)
        bound = 1.0 / (fan_in ** 0.5)
        W = jax.random.uniform(kw, (fan_out, fan_in), jnp.float32, -bound, bound)
        b = jax.random.uniform(kb, (fan_out,), jnp.float32, -bound, bound)
        params.append((W, b))
    return params


def reference_forward(x, params):
    """Pure-JAX reference matching the PyTorch forward."""
    for W, b in params[:-1]:
        x = jnp.maximum(x @ W.T + b, 0.0)   # dropout p=0 == identity
    W, b = params[-1]
    return x @ W.T + b


if __name__ == "__main__":
    num_layers = 3
    input_size = 32
    internal_size = 32    # must equal input_size for the module's forward to be valid
    output_size = 16
    batch = 512           # large enough for meaningful tiles; tile_b -> 256, grid -> 2

    key = jax.random.PRNGKey(0)
    kx, kp = jax.random.split(key)
    x = jax.random.normal(kx, (batch, input_size), dtype=jnp.float32)
    params = init_params(kp, num_layers, input_size, internal_size, output_size)

    out = linear_model_forward(x, params)
    out = jax.block_until_ready(out)

    ref = reference_forward(x, params)
    assert out.shape == (batch, output_size)
    assert jnp.allclose(out, ref, atol=1e-5, rtol=1e-5), "mismatch vs reference"

    print("KERNEL_OK")
</pallas_src>

<mosaic_0001>
module attributes {stable_mosaic.version = 11 : i64} {
  func.func @_mlp_kernel(%arg0: i32, %arg1: memref<256x32xf32, #tpu.memory_space<vmem>>, %arg2: memref<32x32xf32, #tpu.memory_space<vmem>>, %arg3: memref<1x32xf32, #tpu.memory_space<vmem>>, %arg4: memref<32x32xf32, #tpu.memory_space<vmem>>, %arg5: memref<1x32xf32, #tpu.memory_space<vmem>>, %arg6: memref<32x128xf32, #tpu.memory_space<vmem>>, %arg7: memref<1x128xf32, #tpu.memory_space<vmem>>, %arg8: memref<256x128xf32, #tpu.memory_space<vmem>>) attributes {dimension_semantics = [#tpu.dimension_semantics<parallel>], iteration_bounds = array<i64: 2>, scalar_prefetch = 0 : i64, scratch_operands = 0 : i64, tpu.core_type = #tpu.core_type<tc>, window_params = [{transform_indices = @transform_0, window_bounds = array<i64: 256, 32>}, {pipeline_mode = #tpu.pipeline_mode<synchronous>, transform_indices = @transform_1, window_bounds = array<i64: 32, 32>}, {pipeline_mode = #tpu.pipeline_mode<synchronous>, transform_indices = @transform_2, window_bounds = array<i64: 1, 32>}, {pipeline_mode = #tpu.pipeline_mode<synchronous>, transform_indices = @transform_3, window_bounds = array<i64: 32, 32>}, {pipeline_mode = #tpu.pipeline_mode<synchronous>, transform_indices = @transform_4, window_bounds = array<i64: 1, 32>}, {pipeline_mode = #tpu.pipeline_mode<synchronous>, transform_indices = @transform_5, window_bounds = array<i64: 32, 128>}, {pipeline_mode = #tpu.pipeline_mode<synchronous>, transform_indices = @transform_6, window_bounds = array<i64: 1, 128>}, {transform_indices = @transform_7, window_bounds = array<i64: 256, 128>}]} {
    %c0 = arith.constant 0 : index
    %c0_0 = arith.constant 0 : index
    %0 = vector.load %arg1[%c0, %c0_0] : memref<256x32xf32, #tpu.memory_space<vmem>>, vector<256x32xf32>
    %c0_1 = arith.constant 0 : index
    %c0_2 = arith.constant 0 : index
    %1 = vector.load %arg2[%c0_1, %c0_2] : memref<32x32xf32, #tpu.memory_space<vmem>>, vector<32x32xf32>
    %cst = arith.constant dense<0.000000e+00> : vector<256x32xf32>
    %2 = tpu.matmul %0, %1, %cst {dimension_numbers = #tpu.dot_dimension_numbers<[1], [0], [0], [1], [0, 0, 1, 1], [], []>} : vector<256x32xf32>, vector<32x32xf32>, vector<256x32xf32> -> vector<256x32xf32>
    %c0_3 = arith.constant 0 : index
    %c0_4 = arith.constant 0 : index
    %3 = vector.load %arg3[%c0_3, %c0_4] : memref<1x32xf32, #tpu.memory_space<vmem>>, vector<1x32xf32>
    %4 = vector.broadcast %3 : vector<1x32xf32> to vector<256x32xf32>
    %5 = arith.addf %2, %4 : vector<256x32xf32>
    %cst_5 = arith.constant 0.000000e+00 : f32
    %6 = vector.broadcast %cst_5 : f32 to vector<256x32xf32>
    %7 = arith.maximumf %5, %6 : vector<256x32xf32>
    %c0_6 = arith.constant 0 : index
    %c0_7 = arith.constant 0 : index
    %8 = vector.load %arg4[%c0_6, %c0_7] : memref<32x32xf32, #tpu.memory_space<vmem>>, vector<32x32xf32>
    %cst_8 = arith.constant dense<0.000000e+00> : vector<256x32xf32>
    %9 = tpu.matmul %7, %8, %cst_8 {dimension_numbers = #tpu.dot_dimension_numbers<[1], [0], [0], [1], [0, 0, 1, 1], [], []>} : vector<256x32xf32>, vector<32x32xf32>, vector<256x32xf32> -> vector<256x32xf32>
    %c0_9 = arith.constant 0 : index
    %c0_10 = arith.constant 0 : index
    %10 = vector.load %arg5[%c0_9, %c0_10] : memref<1x32xf32, #tpu.memory_space<vmem>>, vector<1x32xf32>
    %11 = vector.broadcast %10 : vector<1x32xf32> to vector<256x32xf32>
    %12 = arith.addf %9, %11 : vector<256x32xf32>
    %cst_11 = arith.constant 0.000000e+00 : f32
    %13 = vector.broadcast %cst_11 : f32 to vector<256x32xf32>
    %14 = arith.maximumf %12, %13 : vector<256x32xf32>
    %c0_12 = arith.constant 0 : index
    %c0_13 = arith.constant 0 : index
    %15 = vector.load %arg6[%c0_12, %c0_13] : memref<32x128xf32, #tpu.memory_space<vmem>>, vector<32x128xf32>
    %cst_14 = arith.constant dense<0.000000e+00> : vector<256x128xf32>
    %16 = tpu.matmul %14, %15, %cst_14 {dimension_numbers = #tpu.dot_dimension_numbers<[1], [0], [0], [1], [0, 0, 1, 1], [], []>} : vector<256x32xf32>, vector<32x128xf32>, vector<256x128xf32> -> vector<256x128xf32>
    %c0_15 = arith.constant 0 : index
    %c0_16 = arith.constant 0 : index
    %17 = vector.load %arg7[%c0_15, %c0_16] : memref<1x128xf32, #tpu.memory_space<vmem>>, vector<1x128xf32>
    %18 = vector.broadcast %17 : vector<1x128xf32> to vector<256x128xf32>
    %19 = arith.addf %16, %18 : vector<256x128xf32>
    %c0_17 = arith.constant 0 : index
    %c0_18 = arith.constant 0 : index
    %20 = vector.load %arg8[%c0_17, %c0_18] : memref<256x128xf32, #tpu.memory_space<vmem>>, vector<256x128xf32>
    tpu.vector_store %arg8[%c0_17, %c0_18], %19 {strides = array<i32>} : memref<256x128xf32, #tpu.memory_space<vmem>>, vector<256x128xf32>,
    return
  }
  func.func @transform_0(%arg0: i32) -> (i32, i32) {
    %c0_i32 = arith.constant 0 : i32
    %c0_i32_0 = arith.constant 0 : i32
    return %arg0, %c0_i32 : i32, i32
  }
  func.func @transform_1(%arg0: i32) -> (i32, i32) {
    %c0_i32 = arith.constant 0 : i32
    %c0_i32_0 = arith.constant 0 : i32
    %c0_i32_1 = arith.constant 0 : i32
    return %c0_i32, %c0_i32_0 : i32, i32
  }
  func.func @transform_2(%arg0: i32) -> (i32, i32) {
    %c0_i32 = arith.constant 0 : i32
    %c0_i32_0 = arith.constant 0 : i32
    %c0_i32_1 = arith.constant 0 : i32
    return %c0_i32, %c0_i32_0 : i32, i32
  }
  func.func @transform_3(%arg0: i32) -> (i32, i32) {
    %c0_i32 = arith.constant 0 : i32
    %c0_i32_0 = arith.constant 0 : i32
    %c0_i32_1 = arith.constant 0 : i32
    return %c0_i32, %c0_i32_0 : i32, i32
  }
  func.func @transform_4(%arg0: i32) -> (i32, i32) {
    %c0_i32 = arith.constant 0 : i32
    %c0_i32_0 = arith.constant 0 : i32
    %c0_i32_1 = arith.constant 0 : i32
    return %c0_i32, %c0_i32_0 : i32, i32
  }
  func.func @transform_5(%arg0: i32) -> (i32, i32) {
    %c0_i32 = arith.constant 0 : i32
    %c0_i32_0 = arith.constant 0 : i32
    %c0_i32_1 = arith.constant 0 : i32
    return %c0_i32, %c0_i32_0 : i32, i32
  }
  func.func @transform_6(%arg0: i32) -> (i32, i32) {
    %c0_i32 = arith.constant 0 : i32
    %c0_i32_0 = arith.constant 0 : i32
    %c0_i32_1 = arith.constant 0 : i32
    return %c0_i32, %c0_i32_0 : i32, i32
  }
  func.func @transform_7(%arg0: i32) -> (i32, i32) {
    %c0_i32 = arith.constant 0 : i32
    %c0_i32_0 = arith.constant 0 : i32
    return %arg0, %c0_i32 : i32, i32
  }
}

</mosaic_0001>

<bundles_post_ra>
// kernel: tpu_custom_call.1
= control target key start
LH: loop header
LB: loop body
LE: loop exit
PB: predicated region body
PF: predicated region fallthrough
CT: control target
= control target key end

     0   :  { %12 = vsyncpa [#allocation3], 0  ;;  %s1809_s0 = inlined_call_operand.vmem [shape: f32[512,32], index: 0, kind: input, shape index: {}]   ;;  %s1810_s1 = inlined_call_operand.vmem [shape: f32[32,32], index: 1, kind: input, shape index: {}]   ;;  %s1811_s2 = inlined_call_operand.vmem [shape: f32[1,32], index: 2, kind: input, shape index: {}]   ;;  %s1812_s3 = inlined_call_operand.vmem [shape: f32[32,32], index: 3, kind: input, shape index: {}]   ;;  %s1813_s4 = inlined_call_operand.vmem [shape: f32[1,32], index: 4, kind: input, shape index: {}]   ;;  %s1814_s5 = inlined_call_operand.vmem [shape: f32[32,128], index: 5, kind: input, shape index: {}]   ;;  %s1815_s6 = inlined_call_operand.vmem [shape: f32[1,128], index: 6, kind: input, shape index: {}]   ;;  %s1816_s7 = inlined_call_operand.hbm [shape: f32[512,128], index: 7, kind: output, shape index: {}]  }
   0x1   :  { %14 = vsyncpa [#allocation3 + $0x1], 0  ;;  %s1409_s24 = smov 0   ;;  %s1411_s25 = smov 0  }
   0x2   :  { %s1413_s26 = smov 0   ;;  %s1415_s27 = smov 0  }
   0x3 LB: > { %s1430_s28 = sadd.s32 4294967295, %s1365_s27   ;;  %s1138_s29 = sadd.s32 4294967294, %s1365_s27   ;;  %s1365_s27 = sphi %s1415_s27, %s1822_s27   ;;  %s1361_s26 = sphi %s1413_s26, %s1821_s26   ;;  %s1357_s25 = sphi %s1411_s25, %s1820_s25   ;;  %s1353_s24 = sphi %s1409_s24, %s1819_s24  }
   0x4   : > { %s1434_s30 = sadd.s32 1, %s1365_s27   ;;  %s179_s8 = sadd.s32 1, %s1361_s26 }
   0x5   : > { %s176_s9 = ssub.s32 %s1365_s27, %s1434_s30  ;;  %p189_p0 = scmp.ne.s32.totalorder %s1361_s26, %s1357_s25 }
   0x6   : > { %p177_p1 = scmp.eq.s32.totalorder %s176_s9, 0  ;;  %p190_p2 = scmp.eq.s32.totalorder %s1430_s28, 1 }
   0x7   : > { %p195_p3 = scmp.ne.s32.totalorder %s1357_s25, %s1353_s24  ;;  %p196_p4 = scmp.eq.s32.totalorder %s1138_s29, 1 }
   0x8   : > { %s1445_s10 = scalar_select %p177_p1, %s1361_s26, %s179_s8  }
   0x9   : > { %p1447_p5 = por %p190_p2, %p189_p0  ;;  %p1451_p6 = por %p196_p4, %p195_p3 }
   0xa   : > { %p1141_p7 = scmp.ge.s32.totalorder %s1365_s27, 1  ;;  %p241_p8 = scmp.lt.s32.totalorder %s1365_s27, 3 }
   0xc   : > { %p242_p9 = pnand %p1141_p7, %p241_p8 }
   0xd   : > { %s1143_s17 = sshll.u32 (!%p242_p9), %s1430_s28, 5  ;;  %s270_s18 = sand.u32 (!%p242_p9), 1, %s1357_s25  }
   0xe   : > { %245 = sbr.rel (%p242_p9) target bundleno = 609 (0x261), region = 48  ;;  %p274_p10 = scmp.lt.s32.totalorder (!%p242_p9), %s1143_s17, 63 }
   0xf   : > { %s1142_s19 = sshll.u32 (!%p242_p9), %s270_s18, 8  ;;  %s1246_s23 = sshll.u32 (!%p242_p9), %s1430_s28, 8 }
  0x10   : > { %s1072_s9 = scalar_lea.hbm (!%p242_p9), %s1816_s7, %s1246_s23  ;;  %s1061_s15 = scalar_lea.sflag (!%p242_p9), [#allocation3], %s270_s18 }
  0x11   : > { %s1075_s14 = sshll.u32 (!%p242_p9), %s1072_s9, 4  ;;  %s1323_s20 = scalar_lea.hbm (!%p242_p9), %s1816_s7, 512  ;;  %s1076_s14 = int_to_ptr.hbm [resolvable:$true] %s1075_s14 }
  0x12   : > { %s1317_s28 = sshra.s32 (!%p242_p9), %s1076_s14, 4  ;;  %s1318_s28 = int_to_ptr.hbm [resolvable:$true] %s1317_s28 }
  0x13   : > { %v315_v0 = vld [vmem:[%s1810_s1 + $0x18] sm:$0xff]  ;;  %v314_v1 = vld [vmem:[%s1810_s1 + $0x10] sm:$0xff]  ;;  %v313_v2 = vld [vmem:[%s1810_s1 + $0x8] sm:$0xff]  ;;  %s1824_s17 = smov (!%p274_p10, %s1143_s17), 63  ;;  %vm320_vm0 = vcmask 261120   ;;  %s1319_s16 = scalar_lea.hbm %s1318_s28, 256 }
  0x14   : > { %429 = vmatpush.msra.mxu0 %v315_v0  ;;  %1247 = vmatpush.msra.mxu3 %v315_v0  ;;  %v312_v3 = vld [vmem:[%s1810_s1] sm:$0xff]  ;;  %s1144_s22 = sshll.u32 %s1824_s17, 3  ;;  %v565_v17 = vld [vmem:[%s1812_s3 + $0x18] sm:$0xff]  ;;  %v564_v19 = vld [vmem:[%s1812_s3 + $0x10] sm:$0xff]  ;;  %p1320_p11 = scmp.ne.s32.totalorder %s1318_s28, %s1319_s16 }
  0x15   : > { %s1473_s8 = scalar_lea.vmem %s1809_s0, %s1144_s22  ;;  %678 = vmatpush.msra.mxu1 %v565_v17  ;;  %v563_v21 = vld [vmem:[%s1812_s3 + $0x8] sm:$0xff]  ;;  %v562_v22 = vld [vmem:[%s1812_s3] sm:$0xff]  ;;  %s1692_s22 = scalar_lea.vmem [#allocation2], %s1142_s19 }
  0x16   : > { %430 = vmatpush.msra.mxu0 %v314_v1  ;;  %1248 = vmatpush.msra.mxu3 %v314_v1  ;;  %v280_v4 = vld [vmem:[%s1473_s8] sm:$0xff]  ;;  %v281_v5 = vld [vmem:[%s1473_s8 + $0x8] sm:$0xff]  ;;  %v282_v6 = vld [vmem:[%s1473_s8 + $0x10] sm:$0xff]  ;;  %s1073_s13 = sshll.u32 %s1692_s22, 4  ;;  %p1321_p12 = pnand %p1320_p11, %p1447_p5  ;;  %s1074_s13 = int_to_ptr.vmem [resolvable:$true] %s1073_s13 }
  0x17   : > { %v283_v7 = vld [vmem:[%s1473_s8 + $0x18] sm:$0xff]  ;;  %v284_v8 = vld [vmem:[%s1473_s8 + $0x20] sm:$0xff]  ;;  %v285_v9 = vld [vmem:[%s1473_s8 + $0x28] sm:$0xff]  ;;  %679 = vmatpush.msra.mxu1 %v564_v19  ;;  %p1324_p0 = scmp.lt.s32.totalorder %s1318_s28, %s1816_s7  ;;  %p1325_p1 = scmp.lt.s32.totalorder %s1323_s20, %s1319_s16 }
  0x18   : > { %431 = vmatpush.msra.mxu0 %v313_v2  ;;  %1249 = vmatpush.msra.mxu3 %v313_v2  ;;  %v286_v10 = vld [vmem:[%s1473_s8 + $0x30] sm:$0xff]  ;;  %v287_v11 = vld [vmem:[%s1473_s8 + $0x38] sm:$0xff]  ;;  %v288_v12 = vld [vmem:[%s1473_s8 + $0x40] sm:$0xff]  ;;  %p1322_p13 = pneg %p1321_p12 }
  0x19   : > { %v289_v13 = vld [vmem:[%s1473_s8 + $0x48] sm:$0xff]  ;;  %v290_v14 = vld [vmem:[%s1473_s8 + $0x50] sm:$0xff]  ;;  %v304_v15 = vld [vmem:[%s1473_s8 + $0xc0] sm:$0xff]  ;;  %680 = vmatpush.msra.mxu1 %v563_v21  ;;  %p1326_p2 = por %p1325_p1, %p1324_p0 }
  0x1a   : > { %432 = vmatpush.msra.mxu0 %v312_v3  ;;  %1250 = vmatpush.msra.mxu3 %v312_v3  ;;  %v291_v16 = vld [vmem:[%s1473_s8 + $0x58] sm:$0xff]  ;;  %v305_v18 = vld [vmem:[%s1473_s8 + $0xc8] sm:$0xff]  ;;  %v292_v20 = vld [vmem:[%s1473_s8 + $0x60] sm:$0xff] }
  0x1b   : > { %1145 = vmatmul.msk.f32.vlgmr.msra.gmra.mxu0 %vm320_vm0, %v280_v4  ;;  %1169 = vmatmul.msk.f32.vlgmr.msra.gmra.mxu3 %vm320_vm0, %v304_v15  ;;  %v306_v23 = vld [vmem:[%s1473_s8 + $0xd0] sm:$0xff]  ;;  %v293_v24 = vld [vmem:[%s1473_s8 + $0x68] sm:$0xff]  ;;  %v307_v25 = vld [vmem:[%s1473_s8 + $0xd8] sm:$0xff]  ;;  %p1327_p3 = pnand %p1326_p2, %p1322_p13 }
  0x1c   : > { %1251 = vmatpush.msrb.mxu3 %v565_v17  ;;  %681 = vmatpush.msra.mxu1 %v562_v22  ;;  %v294_v26 = vld [vmem:[%s1473_s8 + $0x70] sm:$0xff]  ;;  %v308_v27 = vld [vmem:[%s1473_s8 + $0xe0] sm:$0xff]  ;;  %v295_v28 = vld [vmem:[%s1473_s8 + $0x78] sm:$0xff] }
  0x1d   : > { %v1532_v29 = vld [vmem:[%s1811_s2] ss:$0 sm:$0xff]  ;;  %v309_v30 = vld [vmem:[%s1473_s8 + $0xe8] sm:$0xff]  ;;  %v310_v35 = vld [vmem:[%s1473_s8 + $0xf0] sm:$0xff] }
  0x1e   : > { %1252 = vmatpush.msrb.mxu3 %v564_v19  ;;  %v296_v32 = vld [vmem:[%s1473_s8 + $0x80] sm:$0xff]  ;;  %v297_v37 = vld [vmem:[%s1473_s8 + $0x88] sm:$0xff]  ;;  %v311_v40 = vld [vmem:[%s1473_s8 + $0xf8] sm:$0xff] }
  0x1f   : > { %v298_v42 = vld [vmem:[%s1473_s8 + $0x90] sm:$0xff]  ;;  %v299_v46 = vld [vmem:[%s1473_s8 + $0x98] sm:$0xff]  ;;  %v300_v50 = vld [vmem:[%s1473_s8 + $0xa0] sm:$0xff] }
  0x20   : > { %1253 = vmatpush.msrb.mxu3 %v563_v21  ;;  %v301_v54 = vld [vmem:[%s1473_s8 + $0xa8] sm:$0xff]  ;;  %v302_v58 = vld [vmem:[%s1473_s8 + $0xb0] sm:$0xff]  ;;  %v303_v62 = vld [vmem:[%s1473_s8 + $0xb8] sm:$0xff] }
  0x21   : > { %v813_v19 = vld [vmem:[%s1814_s5 + $0x10] sm:$0xff] }
  0x22   : > { %1254 = vmatpush.msrb.mxu3 %v562_v22 }
  0x23   : > { %1146 = vmatmul.msk.f32.gmra.mxu0 %vm320_vm0, %v281_v5  ;;  %1170 = vmatmul.msk.f32.gmra.mxu3 %vm320_vm0, %v305_v18 }
  0x2b   : > { %1147 = vmatmul.msk.f32.gmra.mxu0 %vm320_vm0, %v282_v6  ;;  %1171 = vmatmul.msk.f32.gmra.mxu3 %vm320_vm0, %v306_v23  ;;  %v812_v23 = vld [vmem:[%s1814_s5 + $0x8] sm:$0xff] }
  0x33   : > { %1148 = vmatmul.msk.f32.gmra.mxu0 %vm320_vm0, %v283_v7  ;;  %1172 = vmatmul.msk.f32.gmra.mxu3 %vm320_vm0, %v307_v25  ;;  %v811_v25 = vld [vmem:[%s1814_s5] sm:$0xff] }
  0x3b   : > { %1149 = vmatmul.msk.f32.gmra.mxu0 %vm320_vm0, %v284_v8  ;;  %1173 = vmatmul.msk.f32.gmra.mxu3 %vm320_vm0, %v308_v27 }
  0x43   : > { %1150 = vmatmul.msk.f32.gmra.mxu0 %vm320_vm0, %v285_v9  ;;  %1174 = vmatmul.msk.f32.gmra.mxu3 %vm320_vm0, %v309_v30 }
  0x4b   : > { %1151 = vmatmul.msk.f32.gmra.mxu0 %vm320_vm0, %v286_v10  ;;  %1175 = vmatmul.msk.f32.gmra.mxu3 %vm320_vm0, %v310_v35 }
  0x53   : > { %1152 = vmatmul.msk.f32.gmra.mxu0 %vm320_vm0, %v287_v11  ;;  %1176 = vmatmul.msk.f32.gmra.mxu3 %vm320_vm0, %v311_v40 }
  0x5b   : > { %1153 = vmatmul.msk.f32.gmra.mxu0 %vm320_vm0, %v288_v12 }
  0x63   : > { %1154 = vmatmul.msk.f32.gmra.mxu0 %vm320_vm0, %v289_v13 }
  0x6b   : > { %1155 = vmatmul.msk.f32.gmra.mxu0 %vm320_vm0, %v290_v14 }
  0x73   : > { %1156 = vmatmul.msk.f32.gmra.mxu0 %vm320_vm0, %v291_v16  ;;  %v814_v16 = vld [vmem:[%s1814_s5 + $0x18] sm:$0xff] }
  0x74   : > { %927 = vmatpush.msra.mxu2 %v814_v16  ;;  %1255 = vmatpush.msra.mxu3 %v814_v16 }
  0x76   : > { %928 = vmatpush.msra.mxu2 %v813_v19  ;;  %1256 = vmatpush.msra.mxu3 %v813_v19 }
  0x78   : > { %929 = vmatpush.msra.mxu2 %v812_v23  ;;  %1257 = vmatpush.msra.mxu3 %v812_v23 }
  0x7a   : > { %930 = vmatpush.msra.mxu2 %v811_v25  ;;  %1258 = vmatpush.msra.mxu3 %v811_v25 }
  0x7b   : > { %1157 = vmatmul.msk.f32.gmra.mxu0 %vm320_vm0, %v292_v20 }
  0x83   : > { %1158 = vmatmul.msk.f32.gmra.mxu0 %vm320_vm0, %v293_v24 }
  0x8b   : > { %1159 = vmatmul.msk.f32.gmra.mxu0 %vm320_vm0, %v294_v26 }
  0x93   : > { %1160 = vmatmul.msk.f32.gmra.mxu0 %vm320_vm0, %v295_v28 }
  0x98   : > { %v434_v31 = vpop.f32.mrf.mxu0 }
  0x99   : > { %v435_v33 = vadd.f32 %v1532_v29, %v434_v31 }
  0x9b   : > { %v530_v34 = vmax.f32 %v435_v33, 0.0  ;;  %1161 = vmatmul.msk.f32.gmra.mxu0 %vm320_vm0, %v296_v32 }
  0x9d   : > { %1177 = vmatmul.msk.f32.vlgmr.msra.gmra.mxu1 %vm320_vm0, %v530_v34 }
  0x9e   : > { %v506_v12 = vpop.f32.mrf.mxu3 }
  0x9f   : > { %v507_v14 = vadd.f32 %v1532_v29, %v506_v12 }
  0xa0   : > { %v437_v36 = vpop.f32.mrf.mxu0 }
  0xa1   : > { %v438_v38 = vadd.f32 %v1532_v29, %v437_v36  ;;  %v554_v15 = vmax.f32 %v507_v14, 0.0 }
  0xa3   : > { %v531_v39 = vmax.f32 %v438_v38, 0.0  ;;  %1162 = vmatmul.msk.f32.gmra.mxu0 %vm320_vm0, %v297_v37  ;;  %1201 = vmatmul.msk.f32.vlgmr.msrb.gmra.mxu3 %vm320_vm0, %v554_v15 }
  0xa5   : > { %1178 = vmatmul.msk.f32.gmra.mxu1 %vm320_vm0, %v531_v39 }
  0xa6   : > { %v509_v20 = vpop.f32.mrf.mxu3 }
  0xa7   : > { %v510_v22 = vadd.f32 %v1532_v29, %v509_v20 }
  0xa8   : > { %v440_v41 = vpop.f32.mrf.mxu0 }
  0xa9   : > { %v441_v43 = vadd.f32 %v1532_v29, %v440_v41  ;;  %v555_v24 = vmax.f32 %v510_v22, 0.0 }
  0xab   : > { %v532_v44 = vmax.f32 %v441_v43, 0.0  ;;  %1163 = vmatmul.msk.f32.gmra.mxu0 %vm320_vm0, %v298_v42  ;;  %1202 = vmatmul.msk.f32.gmra.mxu3 %vm320_vm0, %v555_v24 }
  0xad   : > { %1179 = vmatmul.msk.f32.gmra.mxu1 %vm320_vm0, %v532_v44 }
  0xae   : > { %v512_v28 = vpop.f32.mrf.mxu3 }
  0xaf   : > { %v513_v31 = vadd.f32 %v1532_v29, %v512_v28 }
  0xb0   : > { %v443_v45 = vpop.f32.mrf.mxu0 }
  0xb1   : > { %v444_v47 = vadd.f32 %v1532_v29, %v443_v45  ;;  %v556_v32 = vmax.f32 %v513_v31, 0.0  ;;  %v1612_v45 = vld [vmem:[%s1813_s4] ss:$0 sm:$0xff] }
  0xb3   : > { %v533_v48 = vmax.f32 %v444_v47, 0.0  ;;  %1164 = vmatmul.msk.f32.gmra.mxu0 %vm320_vm0, %v299_v46  ;;  %1203 = vmatmul.msk.f32.gmra.mxu3 %vm320_vm0, %v556_v32 }
  0xb5   : > { %1180 = vmatmul.msk.f32.gmra.mxu1 %vm320_vm0, %v533_v48 }
  0xb6   : > { %v515_v35 = vpop.f32.mrf.mxu3 }
  0xb7   : > { %v516_v37 = vadd.f32 %v1532_v29, %v515_v35 }
  0xb8   : > { %v446_v49 = vpop.f32.mrf.mxu0 }
  0xb9   : > { %v447_v51 = vadd.f32 %v1532_v29, %v446_v49  ;;  %v557_v38 = vmax.f32 %v516_v37, 0.0 }
  0xbb   : > { %v534_v52 = vmax.f32 %v447_v51, 0.0  ;;  %1165 = vmatmul.msk.f32.gmra.mxu0 %vm320_vm0, %v300_v50  ;;  %1204 = vmatmul.msk.f32.gmra.mxu3 %vm320_vm0, %v557_v38 }
  0xbd   : > { %1181 = vmatmul.msk.f32.gmra.mxu1 %vm320_vm0, %v534_v52 }
  0xbe   : > { %v518_v41 = vpop.f32.mrf.mxu3 }
  0xbf   : > { %v519_v43 = vadd.f32 %v1532_v29, %v518_v41 }
  0xc0   : > { %v449_v53 = vpop.f32.mrf.mxu0 }
  0xc1   : > { %v450_v55 = vadd.f32 %v1532_v29, %v449_v53  ;;  %v558_v44 = vmax.f32 %v519_v43, 0.0 }
  0xc3   : > { %v535_v56 = vmax.f32 %v450_v55, 0.0  ;;  %1166 = vmatmul.msk.f32.gmra.mxu0 %vm320_vm0, %v301_v54  ;;  %1205 = vmatmul.msk.f32.gmra.mxu3 %vm320_vm0, %v558_v44 }
  0xc5   : > { %1182 = vmatmul.msk.f32.gmra.mxu1 %vm320_vm0, %v535_v56 }
  0xc6   : > { %v521_v49 = vpop.f32.mrf.mxu3 }
  0xc7   : > { %v522_v52 = vadd.f32 %v1532_v29, %v521_v49 }
  0xc8   : > { %v452_v57 = vpop.f32.mrf.mxu0 }
  0xc9   : > { %v453_v59 = vadd.f32 %v1532_v29, %v452_v57  ;;  %v559_v54 = vmax.f32 %v522_v52, 0.0 }
  0xcb   : > { %v536_v60 = vmax.f32 %v453_v59, 0.0  ;;  %1167 = vmatmul.msk.f32.gmra.mxu0 %vm320_vm0, %v302_v58  ;;  %1206 = vmatmul.msk.f32.gmra.mxu3 %vm320_vm0, %v559_v54 }
  0xcd   : > { %1183 = vmatmul.msk.f32.gmra.mxu1 %vm320_vm0, %v536_v60 }
  0xce   : > { %v524_v58 = vpop.f32.mrf.mxu3 }
  0xd0   : > { %v455_v61 = vpop.f32.mrf.mxu0 }
  0xd1   : > { %v456_v63 = vadd.f32 %v1532_v29, %v455_v61  ;;  %v525_v61 = vadd.f32 %v1532_v29, %v524_v58 }
  0xd3   : > { %v537_v0 = vmax.f32 %v456_v63, 0.0  ;;  %1168 = vmatmul.msk.f32.gmra.mxu0 %vm320_vm0, %v303_v62  ;;  %v560_v63 = vmax.f32 %v525_v61, 0.0 }
  0xd5   : > { %1184 = vmatmul.msk.f32.gmra.mxu1 %vm320_vm0, %v537_v0  ;;  %1207 = vmatmul.msk.f32.gmra.mxu3 %vm320_vm0, %v560_v63 }
  0xd8   : > { %v458_v1 = vpop.f32.mrf.mxu0 }
  0xd9   : > { %v459_v2 = vadd.f32 %v1532_v29, %v458_v1 }
  0xdb   : > { %v538_v3 = vmax.f32 %v459_v2, 0.0 }
  0xdd   : > { %1185 = vmatmul.msk.f32.gmra.mxu1 %vm320_vm0, %v538_v3  ;;  %v527_v3 = vpop.f32.mrf.mxu3 }
  0xe0   : > { %v461_v4 = vpop.f32.mrf.mxu0 }
  0xe1   : > { %v462_v5 = vadd.f32 %v1532_v29, %v461_v4 }
  0xe3   : > { %v539_v6 = vmax.f32 %v462_v5, 0.0 }
  0xe5   : > { %1186 = vmatmul.msk.f32.gmra.mxu1 %vm320_vm0, %v539_v6  ;;  %v528_v6 = vadd.f32 %v1532_v29, %v527_v3 }
  0xe8   : > { %v464_v7 = vpop.f32.mrf.mxu0 }
  0xe9   : > { %v465_v8 = vadd.f32 %v1532_v29, %v464_v7 }
  0xeb   : > { %v540_v9 = vmax.f32 %v465_v8, 0.0  ;;  %v561_v8 = vmax.f32 %v528_v6, 0.0 }
  0xed   : > { %1187 = vmatmul.msk.f32.gmra.mxu1 %vm320_vm0, %v540_v9  ;;  %1208 = vmatmul.msk.f32.gmra.mxu3 %vm320_vm0, %v561_v8 }
  0xf0   : > { %v467_v10 = vpop.f32.mrf.mxu0 }
  0xf1   : > { %v468_v11 = vadd.f32 %v1532_v29, %v467_v10 }
  0xf3   : > { %v541_v13 = vmax.f32 %v468_v11, 0.0 }
  0xf5   : > { %1188 = vmatmul.msk.f32.gmra.mxu1 %vm320_vm0, %v541_v13 }
  0xf8   : > { %v470_v17 = vpop.f32.mrf.mxu0 }
  0xf9   : > { %v471_v18 = vadd.f32 %v1532_v29, %v470_v17 }
  0xfb   : > { %v542_v21 = vmax.f32 %v471_v18, 0.0 }
  0xfd   : > { %1189 = vmatmul.msk.f32.gmra.mxu1 %vm320_vm0, %v542_v21 }
 0x100   : > { %v473_v26 = vpop.f32.mrf.mxu0 }
 0x101   : > { %v474_v27 = vadd.f32 %v1532_v29, %v473_v26 }
 0x103   : > { %v543_v30 = vmax.f32 %v474_v27, 0.0 }
 0x105   : > { %1190 = vmatmul.msk.f32.gmra.mxu1 %vm320_vm0, %v543_v30 }
 0x108   : > { %v476_v33 = vpop.f32.mrf.mxu0 }
 0x109   : > { %v477_v34 = vadd.f32 %v1532_v29, %v476_v33 }
 0x10b   : > { %v544_v36 = vmax.f32 %v477_v34, 0.0 }
 0x10d   : > { %1191 = vmatmul.msk.f32.gmra.mxu1 %vm320_vm0, %v544_v36 }
 0x110   : > { %v479_v39 = vpop.f32.mrf.mxu0 }
 0x111   : > { %v480_v40 = vadd.f32 %v1532_v29, %v479_v39 }
 0x113   : > { %v545_v42 = vmax.f32 %v480_v40, 0.0 }
 0x115   : > { %1192 = vmatmul.msk.f32.gmra.mxu1 %vm320_vm0, %v545_v42 }
 0x118   : > { %v482_v46 = vpop.f32.mrf.mxu0 }
 0x119   : > { %v483_v47 = vadd.f32 %v1532_v29, %v482_v46 }
 0x11a   : > { %v683_v48 = vpop.f32.mrf.mxu1 }
 0x11b   : > { %v546_v50 = vmax.f32 %v483_v47, 0.0  ;;  %v684_v51 = vadd.f32 %v1612_v45, %v683_v48 }
 0x11d   : > { %v779_v53 = vmax.f32 %v684_v51, 0.0  ;;  %1193 = vmatmul.msk.f32.gmra.mxu1 %vm320_vm0, %v546_v50 }
 0x11f   : > { %1209 = vmatmul.msk.f32.vlgmr.msra.gmra.mxu2 %vm320_vm0, %v779_v53 }
 0x120   : > { %v485_v55 = vpop.f32.mrf.mxu0 }
 0x121   : > { %v486_v56 = vadd.f32 %v1532_v29, %v485_v55 }
 0x122   : > { %v686_v57 = vpop.f32.mrf.mxu1 }
 0x123   : > { %v547_v59 = vmax.f32 %v486_v56, 0.0  ;;  %v687_v60 = vadd.f32 %v1612_v45, %v686_v57 }
 0x125   : > { %v780_v62 = vmax.f32 %v687_v60, 0.0  ;;  %1194 = vmatmul.msk.f32.gmra.mxu1 %vm320_vm0, %v547_v59 }
 0x126   : > { %v755_v53 = vpop.f32.mrf.mxu3 }
 0x127   : > { %1210 = vmatmul.msk.f32.gmra.mxu2 %vm320_vm0, %v780_v62  ;;  %v756_v55 = vadd.f32 %v1612_v45, %v755_v53 }
 0x128   : > { %v488_v0 = vpop.f32.mrf.mxu0 }
 0x129   : > { %v489_v1 = vadd.f32 %v1532_v29, %v488_v0  ;;  %v803_v57 = vmax.f32 %v756_v55, 0.0 }
 0x12a   : > { %v689_v2 = vpop.f32.mrf.mxu1 }
 0x12b   : > { %v548_v4 = vmax.f32 %v489_v1, 0.0  ;;  %v690_v5 = vadd.f32 %v1612_v45, %v689_v2  ;;  %1233 = vmatmul.msk.f32.vlgmr.msra.gmra.mxu3 %vm320_vm0, %v803_v57 }
 0x12d   : > { %v781_v7 = vmax.f32 %v690_v5, 0.0  ;;  %1195 = vmatmul.msk.f32.gmra.mxu1 %vm320_vm0, %v548_v4 }
 0x12e   : > { %v758_v59 = vpop.f32.mrf.mxu3 }
 0x12f   : > { %1211 = vmatmul.msk.f32.gmra.mxu2 %vm320_vm0, %v781_v7  ;;  %v759_v61 = vadd.f32 %v1612_v45, %v758_v59 }
 0x130   : > { %v491_v9 = vpop.f32.mrf.mxu0 }
 0x131   : > { %v492_v10 = vadd.f32 %v1532_v29, %v491_v9  ;;  %v804_v63 = vmax.f32 %v759_v61, 0.0 }
 0x132   : > { %v692_v11 = vpop.f32.mrf.mxu1 }
 0x133   : > { %v549_v12 = vmax.f32 %v492_v10, 0.0  ;;  %v693_v13 = vadd.f32 %v1612_v45, %v692_v11  ;;  %1234 = vmatmul.msk.f32.gmra.mxu3 %vm320_vm0, %v804_v63 }
 0x135   : > { %v782_v14 = vmax.f32 %v693_v13, 0.0  ;;  %1196 = vmatmul.msk.f32.gmra.mxu1 %vm320_vm0, %v549_v12 }
 0x136   : > { %v761_v1 = vpop.f32.mrf.mxu3 }
 0x137   : > { %1212 = vmatmul.msk.f32.gmra.mxu2 %vm320_vm0, %v782_v14  ;;  %v762_v3 = vadd.f32 %v1612_v45, %v761_v1 }
 0x138   : > { %v494_v15 = vpop.f32.mrf.mxu0 }
 0x139   : > { %v495_v16 = vadd.f32 %v1532_v29, %v494_v15  ;;  %v805_v5 = vmax.f32 %v762_v3, 0.0 }
 0x13a   : > { %v695_v17 = vpop.f32.mrf.mxu1 }
 0x13b   : > { %v550_v18 = vmax.f32 %v495_v16, 0.0  ;;  %v696_v19 = vadd.f32 %v1612_v45, %v695_v17  ;;  %1235 = vmatmul.msk.f32.gmra.mxu3 %vm320_vm0, %v805_v5 }
 0x13d   : > { %v783_v20 = vmax.f32 %v696_v19, 0.0  ;;  %1197 = vmatmul.msk.f32.gmra.mxu1 %vm320_vm0, %v550_v18  ;;  %v1686_v18 = vld [vmem:[%s1815_s6] ss:$0 sm:$0xff] }
 0x13e   : > { %v764_v7 = vpop.f32.mrf.mxu3 }
 0x13f   : > { %1213 = vmatmul.msk.f32.gmra.mxu2 %vm320_vm0, %v783_v20  ;;  %v765_v9 = vadd.f32 %v1612_v45, %v764_v7 }
 0x140   : > { %v497_v21 = vpop.f32.mrf.mxu0 }
 0x141   : > { %v498_v22 = vadd.f32 %v1532_v29, %v497_v21  ;;  %v806_v11 = vmax.f32 %v765_v9, 0.0 }
 0x142   : > { %v698_v23 = vpop.f32.mrf.mxu1 }
 0x143   : > { %v551_v24 = vmax.f32 %v498_v22, 0.0  ;;  %v699_v25 = vadd.f32 %v1612_v45, %v698_v23  ;;  %1236 = vmatmul.msk.f32.gmra.mxu3 %vm320_vm0, %v806_v11 }
 0x145   : > { %v784_v26 = vmax.f32 %v699_v25, 0.0  ;;  %1198 = vmatmul.msk.f32.gmra.mxu1 %vm320_vm0, %v551_v24 }
 0x146   : > { %v767_v13 = vpop.f32.mrf.mxu3 }
 0x147   : > { %1214 = vmatmul.msk.f32.gmra.mxu2 %vm320_vm0, %v784_v26  ;;  %v768_v15 = vadd.f32 %v1612_v45, %v767_v13 }
 0x148   : > { %v500_v27 = vpop.f32.mrf.mxu0 }
 0x149   : > { %v501_v28 = vadd.f32 %v1532_v29, %v500_v27  ;;  %v807_v17 = vmax.f32 %v768_v15, 0.0 }
 0x14a   : > { %v701_v30 = vpop.f32.mrf.mxu1 }
 0x14b   : > { %v552_v31 = vmax.f32 %v501_v28, 0.0  ;;  %v702_v32 = vadd.f32 %v1612_v45, %v701_v30  ;;  %1237 = vmatmul.msk.f32.gmra.mxu3 %vm320_vm0, %v807_v17 }
 0x14d   : > { %v785_v33 = vmax.f32 %v702_v32, 0.0  ;;  %1199 = vmatmul.msk.f32.gmra.mxu1 %vm320_vm0, %v552_v31 }
 0x14e   : > { %v770_v23 = vpop.f32.mrf.mxu3 }
 0x14f   : > { %1215 = vmatmul.msk.f32.gmra.mxu2 %vm320_vm0, %v785_v33  ;;  %v771_v24 = vadd.f32 %v1612_v45, %v770_v23 }
 0x150   : > { %v503_v34 = vpop.f32.mrf.mxu0 }
 0x151   : > { %v504_v35 = vadd.f32 %v1532_v29, %v503_v34  ;;  %v808_v26 = vmax.f32 %v771_v24, 0.0 }
 0x152   : > { %v704_v36 = vpop.f32.mrf.mxu1 }
 0x153   : > { %v553_v37 = vmax.f32 %v504_v35, 0.0  ;;  %v705_v38 = vadd.f32 %v1612_v45, %v704_v36  ;;  %1238 = vmatmul.msk.f32.gmra.mxu3 %vm320_vm0, %v808_v26 }
 0x155   : > { %v786_v39 = vmax.f32 %v705_v38, 0.0  ;;  %1200 = vmatmul.msk.f32.gmra.mxu1 %vm320_vm0, %v553_v37 }
 0x157   : > { %1216 = vmatmul.msk.f32.gmra.mxu2 %vm320_vm0, %v786_v39 }
 0x158   : > { %v773_v32 = vpop.f32.mrf.mxu3 }
 0x159   : > { %v774_v33 = vadd.f32 %v1612_v45, %v773_v32 }
 0x15a   : > { %v707_v40 = vpop.f32.mrf.mxu1 }
 0x15b   : > { %v708_v41 = vadd.f32 %v1612_v45, %v707_v40  ;;  %v809_v35 = vmax.f32 %v774_v33, 0.0 }
 0x15d   : > { %v787_v42 = vmax.f32 %v708_v41, 0.0  ;;  %1239 = vmatmul.msk.f32.gmra.mxu3 %vm320_vm0, %v809_v35 }
 0x15f   : > { %1217 = vmatmul.msk.f32.gmra.mxu2 %vm320_vm0, %v787_v42 }
 0x162   : > { %v710_v43 = vpop.f32.mrf.mxu1 }
 0x163   : > { %v711_v44 = vadd.f32 %v1612_v45, %v710_v43 }
 0x165   : > { %v788_v46 = vmax.f32 %v711_v44, 0.0 }
 0x167   : > { %1218 = vmatmul.msk.f32.gmra.mxu2 %vm320_vm0, %v788_v46 }
 0x16a   : > { %v713_v29 = vpop.f32.mrf.mxu1 }
 0x16b   : > { %v714_v47 = vadd.f32 %v1612_v45, %v713_v29 }
 0x16d   : > { %v789_v48 = vmax.f32 %v714_v47, 0.0 }
 0x16f   : > { %1219 = vmatmul.msk.f32.gmra.mxu2 %vm320_vm0, %v789_v48 }
 0x170   : > { %v776_v40 = vpop.f32.mrf.mxu3 }
 0x171   : > { %v777_v41 = vadd.f32 %v1612_v45, %v776_v40 }
 0x172   : > { %v716_v49 = vpop.f32.mrf.mxu1 }
 0x173   : > { %v717_v50 = vadd.f32 %v1612_v45, %v716_v49  ;;  %v810_v43 = vmax.f32 %v777_v41, 0.0 }
 0x175   : > { %v790_v51 = vmax.f32 %v717_v50, 0.0  ;;  %1240 = vmatmul.msk.f32.gmra.mxu3 %vm320_vm0, %v810_v43 }
 0x177   : > { %1220 = vmatmul.msk.f32.gmra.mxu2 %vm320_vm0, %v790_v51 }
 0x17a   : > { %v719_v52 = vpop.f32.mrf.mxu1 }
 0x17b   : > { %v720_v54 = vadd.f32 %v1612_v45, %v719_v52 }
 0x17d   : > { %v791_v56 = vmax.f32 %v720_v54, 0.0 }
 0x17f   : > { %1221 = vmatmul.msk.f32.gmra.mxu2 %vm320_vm0, %v791_v56 }
 0x182   : > { %v722_v58 = vpop.f32.mrf.mxu1 }
 0x183   : > { %v723_v60 = vadd.f32 %v1612_v45, %v722_v58 }
 0x185   : > { %v792_v62 = vmax.f32 %v723_v60, 0.0 }
 0x187   : > { %1222 = vmatmul.msk.f32.gmra.mxu2 %vm320_vm0, %v792_v62 }
 0x18a   : > { %v725_v0 = vpop.f32.mrf.mxu1 }
 0x18b   : > { %v726_v2 = vadd.f32 %v1612_v45, %v725_v0 }
 0x18d   : > { %v793_v4 = vmax.f32 %v726_v2, 0.0 }
 0x18f   : > { %1223 = vmatmul.msk.f32.gmra.mxu2 %vm320_vm0, %v793_v4 }
 0x192   : > { %v728_v6 = vpop.f32.mrf.mxu1 }
 0x193   : > { %v729_v8 = vadd.f32 %v1612_v45, %v728_v6 }
 0x195   : > { %v794_v10 = vmax.f32 %v729_v8, 0.0 }
 0x197   : > { %1224 = vmatmul.msk.f32.gmra.mxu2 %vm320_vm0, %v794_v10 }
 0x19a   : > { %v731_v12 = vpop.f32.mrf.mxu1 }
 0x19b   : > { %v732_v14 = vadd.f32 %v1612_v45, %v731_v12 }
 0x19d   : > { %v795_v16 = vmax.f32 %v732_v14, 0.0 }
 0x19f   : > { %1225 = vmatmul.msk.f32.gmra.mxu2 %vm320_vm0, %v795_v16 }
 0x1a2   : > { %v734_v19 = vpop.f32.mrf.mxu1  ;;  %v932_v20 = vpop.f32.mrf.mxu2 }
 0x1a3   : > { %v735_v21 = vadd.f32 %v1612_v45, %v734_v19  ;;  %v933_v22 = vadd.f32 %v1686_v18, %v932_v20 }
 0x1a5   : > { %v796_v25 = vmax.f32 %v735_v21, 0.0  ;;  %1028 = vst [vmem:[%s1692_s22] sm:$0xff] %v933_v22 }
 0x1a7   : > { %1226 = vmatmul.msk.f32.gmra.mxu2 %vm320_vm0, %v796_v25 }
 0x1aa   : > { %v737_v27 = vpop.f32.mrf.mxu1  ;;  %v935_v28 = vpop.f32.mrf.mxu2 }
 0x1ab   : > { %v738_v30 = vadd.f32 %v1612_v45, %v737_v27  ;;  %v936_v31 = vadd.f32 %v1686_v18, %v935_v28 }
 0x1ad   : > { %v797_v34 = vmax.f32 %v738_v30, 0.0  ;;  %1029 = vst [vmem:[%s1692_s22 + $0x8] sm:$0xff] %v936_v31 }
 0x1ae   : > { %v1004_v10 = vpop.f32.mrf.mxu3 }
 0x1af   : > { %1227 = vmatmul.msk.f32.gmra.mxu2 %vm320_vm0, %v797_v34  ;;  %v1005_v12 = vadd.f32 %v1686_v18, %v1004_v10 }
 0x1b1   : > { %1052 = vst [vmem:[%s1692_s22 + $0xc0] sm:$0xff] %v1005_v12 }
 0x1b2   : > { %v740_v36 = vpop.f32.mrf.mxu1  ;;  %v938_v37 = vpop.f32.mrf.mxu2 }
 0x1b3   : > { %v741_v38 = vadd.f32 %v1612_v45, %v740_v36  ;;  %v939_v39 = vadd.f32 %v1686_v18, %v938_v37 }
 0x1b5   : > { %v798_v42 = vmax.f32 %v741_v38, 0.0  ;;  %1030 = vst [vmem:[%s1692_s22 + $0x10] sm:$0xff] %v939_v39 }
 0x1b6   : > { %v1007_v14 = vpop.f32.mrf.mxu3 }
 0x1b7   : > { %1228 = vmatmul.msk.f32.gmra.mxu2 %vm320_vm0, %v798_v42  ;;  %v1008_v16 = vadd.f32 %v1686_v18, %v1007_v14 }
 0x1b9   : > { %1053 = vst [vmem:[%s1692_s22 + $0xc8] sm:$0xff] %v1008_v16 }
 0x1ba   : > { %v743_v44 = vpop.f32.mrf.mxu1  ;;  %v941_v46 = vpop.f32.mrf.mxu2 }
 0x1bb   : > { %v744_v29 = vadd.f32 %v1612_v45, %v743_v44  ;;  %v942_v47 = vadd.f32 %v1686_v18, %v941_v46 }
 0x1bd   : > { %v799_v48 = vmax.f32 %v744_v29, 0.0  ;;  %1031 = vst [vmem:[%s1692_s22 + $0x18] sm:$0xff] %v942_v47 }
 0x1be   : > { %v1010_v19 = vpop.f32.mrf.mxu3 }
 0x1bf   : > { %1229 = vmatmul.msk.f32.gmra.mxu2 %vm320_vm0, %v799_v48  ;;  %v1011_v21 = vadd.f32 %v1686_v18, %v1010_v19 }
 0x1c1   : > { %1054 = vst [vmem:[%s1692_s22 + $0xd0] sm:$0xff] %v1011_v21 }
 0x1c2   : > { %v746_v49 = vpop.f32.mrf.mxu1  ;;  %v944_v50 = vpop.f32.mrf.mxu2 }
 0x1c3   : > { %v747_v51 = vadd.f32 %v1612_v45, %v746_v49  ;;  %v945_v52 = vadd.f32 %v1686_v18, %v944_v50 }
 0x1c5   : > { %v800_v53 = vmax.f32 %v747_v51, 0.0  ;;  %1032 = vst [vmem:[%s1692_s22 + $0x20] sm:$0xff] %v945_v52 }
 0x1c6   : > { %v1013_v23 = vpop.f32.mrf.mxu3 }
 0x1c7   : > { %1230 = vmatmul.msk.f32.gmra.mxu2 %vm320_vm0, %v800_v53  ;;  %v1014_v25 = vadd.f32 %v1686_v18, %v1013_v23 }
 0x1c9   : > { %1055 = vst [vmem:[%s1692_s22 + $0xd8] sm:$0xff] %v1014_v25 }
 0x1ca   : > { %v749_v54 = vpop.f32.mrf.mxu1  ;;  %v947_v55 = vpop.f32.mrf.mxu2 }
 0x1cb   : > { %v750_v56 = vadd.f32 %v1612_v45, %v749_v54  ;;  %v948_v57 = vadd.f32 %v1686_v18, %v947_v55 }
 0x1cd   : > { %v801_v58 = vmax.f32 %v750_v56, 0.0  ;;  %1033 = vst [vmem:[%s1692_s22 + $0x28] sm:$0xff] %v948_v57 }
 0x1ce   : > { %v1016_v27 = vpop.f32.mrf.mxu3 }
 0x1cf   : > { %1231 = vmatmul.msk.f32.gmra.mxu2 %vm320_vm0, %v801_v58  ;;  %v1017_v30 = vadd.f32 %v1686_v18, %v1016_v27 }
 0x1d1   : > { %1056 = vst [vmem:[%s1692_s22 + $0xe0] sm:$0xff] %v1017_v30 }
 0x1d2   : > { %v752_v59 = vpop.f32.mrf.mxu1  ;;  %v950_v60 = vpop.f32.mrf.mxu2 }
 0x1d3   : > { %v753_v61 = vadd.f32 %v1612_v45, %v752_v59  ;;  %v951_v62 = vadd.f32 %v1686_v18, %v950_v60 }
 0x1d5   : > { %v802_v63 = vmax.f32 %v753_v61, 0.0  ;;  %1034 = vst [vmem:[%s1692_s22 + $0x30] sm:$0xff] %v951_v62 }
 0x1d6   : > { %v1019_v33 = vpop.f32.mrf.mxu3 }
 0x1d7   : > { %1232 = vmatmul.msk.f32.gmra.mxu2 %vm320_vm0, %v802_v63  ;;  %v1020_v34 = vadd.f32 %v1686_v18, %v1019_v33 }
 0x1d9   : > { %1057 = vst [vmem:[%s1692_s22 + $0xe8] sm:$0xff] %v1020_v34 }
 0x1da   : > { %v953_v0 = vpop.f32.mrf.mxu2 }
 0x1db   : > { %v954_v1 = vadd.f32 %v1686_v18, %v953_v0 }
 0x1dd   : > { %1035 = vst [vmem:[%s1692_s22 + $0x38] sm:$0xff] %v954_v1 }
 0x1e0   : > { %v1022_v37 = vpop.f32.mrf.mxu3 }
 0x1e1   : > { %v1023_v38 = vadd.f32 %v1686_v18, %v1022_v37 }
 0x1e2   : > { %v956_v2 = vpop.f32.mrf.mxu2 }
 0x1e3   : > { %v957_v3 = vadd.f32 %v1686_v18, %v956_v2  ;;  %1058 = vst [vmem:[%s1692_s22 + $0xf0] sm:$0xff] %v1023_v38 }
 0x1e5   : > { %1036 = vst [vmem:[%s1692_s22 + $0x40] sm:$0xff] %v957_v3 }
 0x1ea   : > { %v959_v4 = vpop.f32.mrf.mxu2 }
 0x1eb   : > { %v960_v45 = vadd.f32 %v1686_v18, %v959_v4 }
 0x1ed   : > { %1037 = vst [vmem:[%s1692_s22 + $0x48] sm:$0xff] %v960_v45 }
 0x1f2   : > { %v962_v5 = vpop.f32.mrf.mxu2 }
 0x1f3   : > { %v963_v6 = vadd.f32 %v1686_v18, %v962_v5 }
 0x1f5   : > { %1038 = vst [vmem:[%s1692_s22 + $0x50] sm:$0xff] %v963_v6 }
 0x1f8   : > { %v1025_v41 = vpop.f32.mrf.mxu3 }
 0x1f9   : > { %v1026_v42 = vadd.f32 %v1686_v18, %v1025_v41 }
 0x1fa   : > { %v965_v7 = vpop.f32.mrf.mxu2 }
 0x1fb   : > { %v966_v8 = vadd.f32 %v1686_v18, %v965_v7  ;;  %1059 = vst [vmem:[%s1692_s22 + $0xf8] sm:$0xff] %v1026_v42 }
 0x1fd   : > { %1039 = vst [vmem:[%s1692_s22 + $0x58] sm:$0xff] %v966_v8 }
 0x202   : > { %v968_v9 = vpop.f32.mrf.mxu2 }
 0x203   : > { %v969_v11 = vadd.f32 %v1686_v18, %v968_v9 }
 0x205   : > { %1040 = vst [vmem:[%s1692_s22 + $0x60] sm:$0xff] %v969_v11 }
 0x20a   : > { %v971_v13 = vpop.f32.mrf.mxu2 }
 0x20b   : > { %v972_v15 = vadd.f32 %v1686_v18, %v971_v13 }
 0x20d   : > { %1041 = vst [vmem:[%s1692_s22 + $0x68] sm:$0xff] %v972_v15 }
 0x212   : > { %v974_v17 = vpop.f32.mrf.mxu2 }
 0x213   : > { %v975_v20 = vadd.f32 %v1686_v18, %v974_v17 }
 0x215   : > { %1042 = vst [vmem:[%s1692_s22 + $0x70] sm:$0xff] %v975_v20 }
 0x21a   : > { %v977_v22 = vpop.f32.mrf.mxu2 }
 0x21b   : > { %v978_v24 = vadd.f32 %v1686_v18, %v977_v22 }
 0x21d   : > { %1043 = vst [vmem:[%s1692_s22 + $0x78] sm:$0xff] %v978_v24 }
 0x222   : > { %v980_v26 = vpop.f32.mrf.mxu2 }
 0x223   : > { %v981_v28 = vadd.f32 %v1686_v18, %v980_v26 }
 0x225   : > { %1044 = vst [vmem:[%s1692_s22 + $0x80] sm:$0xff] %v981_v28 }
 0x22a   : > { %v983_v31 = vpop.f32.mrf.mxu2 }
 0x22b   : > { %v984_v32 = vadd.f32 %v1686_v18, %v983_v31 }
 0x22d   : > { %1045 = vst [vmem:[%s1692_s22 + $0x88] sm:$0xff] %v984_v32 }
 0x232   : > { %v986_v35 = vpop.f32.mrf.mxu2 }
 0x233   : > { %v987_v36 = vadd.f32 %v1686_v18, %v986_v35 }
 0x235   : > { %1046 = vst [vmem:[%s1692_s22 + $0x90] sm:$0xff] %v987_v36 }
 0x23a   : > { %v989_v39 = vpop.f32.mrf.mxu2 }
 0x23b   : > { %v990_v40 = vadd.f32 %v1686_v18, %v989_v39 }
 0x23d   : > { %1047 = vst [vmem:[%s1692_s22 + $0x98] sm:$0xff] %v990_v40 }
 0x242   : > { %v992_v43 = vpop.f32.mrf.mxu2 }
 0x243   : > { %v993_v44 = vadd.f32 %v1686_v18, %v992_v43 }
 0x245   : > { %1048 = vst [vmem:[%s1692_s22 + $0xa0] sm:$0xff] %v993_v44 }
 0x24a   : > { %v995_v46 = vpop.f32.mrf.mxu2 }
 0x24b   : > { %v996_v29 = vadd.f32 %v1686_v18, %v995_v46 }
 0x24d   : > { %1049 = vst [vmem:[%s1692_s22 + $0xa8] sm:$0xff] %v996_v29 }
 0x252   : > { %v998_v47 = vpop.f32.mrf.mxu2 }
 0x253   : > { %v999_v48 = vadd.f32 %v1686_v18, %v998_v47 }
 0x255   : > { %1050 = vst [vmem:[%s1692_s22 + $0xb0] sm:$0xff] %v999_v48 }
 0x25a   : > { %v1001_v49 = vpop.f32.mrf.mxu2 }
 0x25b   : > { %v1002_v50 = vadd.f32 %v1686_v18, %v1001_v49 }
 0x25d   : > { %1051 = vst [vmem:[%s1692_s22 + $0xb8] sm:$0xff] %v1002_v50 }
 0x25e   : > { %1330 = shalt.err (!%p1327_p3)
}
 0x25f   : > { %s1367_s18 = smov 128   ;;  %s1368_s22 = smov 8  }
 0x260   : > { %1259 = dma.vmem_to_hbm [thread:$0]  (%p1447_p5), %s1074_s13, 4096, %s1076_s14, %s1061_s15, %s1367_s18, %s1367_s18, %s1368_s22  }
 0x261 PF: > { %p1265_p4 = scmp.ge.s32.totalorder %s1365_s27, 2  ;;  %s1090_s29 = sand.u32 1, %s1353_s24  }
 0x262   : > { %s1091_s8 = scalar_lea.sflag [#allocation3], %s1090_s29 }
 0x263   : > { %p1262_p7 = pnand %p1265_p4, %p1451_p6 }
 0x265   : > { %p1263_p8 = pneg %p1262_p7 }
 0x267   : > { %1348 = dma.done.wait (%p1263_p8), %s1091_s8, 4096  }
 0x268   : > { %1350 = vsyncadd (%p1263_p8), %s1091_s8, 4294963200  ;;  %p17_p9 = scmp.ge.s32.totalorder %s1434_s30, 4   ;;  %s1819_s24 = smov %s1357_s25 }
 0x269   : > { %s1820_s25 = smov %s1361_s26  ;;  %s1821_s26 = smov %s1445_s10 }
 0x26a   : > { %s1822_s27 = smov %s1434_s30  ;;  %19 = sbr.rel (!%p17_p9) target bundleno = 3 (0x3), region = 83 }
 0x26f   :  { %1097 = vsyncpa [#allocation3], 1 }
 0x270   :  { %1099 = vsyncpa [#allocation3 + $0x1], 1 }

</bundles_post_ra>
